<compile_context>
chip_gen: v7x
topology: tpu7x:2x2x1
jax: 0.10.0
libtpu: 0.0.40
codegen_flags: <defaults>
</compile_context>

<pallas_src>
import math

import jax
import jax.numpy as jnp
from jax.experimental import pallas as pl
from jax.experimental.pallas import tpu as pltpu

_INV_SQRT2 = 1.0 / math.sqrt(2.0)


def _gelu_exact(h):
    # exact erf-based GELU (matches nn.GELU() default), computed in f32
    return 0.5 * h * (1.0 + jax.lax.erf(h * _INV_SQRT2))


def _expert_fused_kernel(x_ref, w1_ref, b1_ref, w2_ref, b2_ref, scale_ref, o_ref):
    """Fast path: weights fully VMEM-resident, no reduction axis.

    x_ref:     (tm, Hp)          input / residual rows
    w1_ref:    (H4p, Hp)         fc1 weight (torch layout), resident
    b1_ref:    (1, H4p)
    w2_ref:    (H4p, Hp)         fc2 weight transposed, resident
    b2_ref:    (1, Hp)
    scale_ref: (1, Hp)
    o_ref:     (tm, Hp)
    """
    x = x_ref[...]
    w1 = w1_ref[...]
    w2 = w2_ref[...]

    # fc1: x (tm, Hp) . W1 (H4p, Hp)^T -> (tm, H4p); native-dtype operands
    # (bf16 hits the bf16 MXU path), f32 accumulation.
    h = jax.lax.dot_general(x, w1, (((1,), (1,)), ((), ())),
                            preferred_element_type=jnp.float32)
    h = _gelu_exact(h + b1_ref[...].astype(jnp.float32))
    # dropout: identity (eval mode)

    y = jnp.dot(h.astype(w2.dtype), w2, preferred_element_type=jnp.float32)
    y = y + b2_ref[...].astype(jnp.float32)

    out = x.astype(jnp.float32) + y * scale_ref[...].astype(jnp.float32)
    o_ref[...] = out.astype(o_ref.dtype)


def _expert_kernel(x_ref, w1_ref, b1_ref, w2_ref, b2_ref, scale_ref, o_ref,
                   acc_ref):
    """Reduction path: the 4H intermediate dim is tiled along grid axis 1.

    x_ref:     (tm, Hp)          input / residual rows (same block for all k)
    w1_ref:    (tk, Hp)          fc1 weight chunk (torch layout, contiguous DMA)
    b1_ref:    (1, tk)
    w2_ref:    (tk, Hp)          fc2 weight chunk (contiguous DMA)
    b2_ref:    (1, Hp)
    scale_ref: (1, Hp)
    o_ref:     (tm, Hp)
    acc_ref:   (tm, Hp) f32      partial fc2 accumulator (scratch)
    """
    k = pl.program_id(1)
    nk = pl.num_programs(1)

    @pl.when(k == 0)
    def _():
        acc_ref[...] = jnp.zeros_like(acc_ref)

    x = x_ref[...]
    w1 = w1_ref[...]
    w2 = w2_ref[...]

    # fc1 chunk: x (tm, Hp) . W1_chunk (tk, Hp)^T -> (tm, tk), f32 accumulate.
    h = jax.lax.dot_general(x, w1, (((1,), (1,)), ((), ())),
                            preferred_element_type=jnp.float32)
    h = _gelu_exact(h + b1_ref[...].astype(jnp.float32))
    # dropout: identity (eval mode)

    # fc2 partial product, accumulated in f32 scratch across k chunks
    acc_ref[...] += jnp.dot(h.astype(w2.dtype), w2,
                            preferred_element_type=jnp.float32)

    @pl.when(k == nk - 1)
    def _():
        y = acc_ref[...] + b2_ref[...].astype(jnp.float32)
        out = x.astype(jnp.float32) + y * scale_ref[...].astype(jnp.float32)
        o_ref[...] = out.astype(o_ref.dtype)


def _round_up(v, m):
    return (v + m - 1) // m * m


def _pad2(a, rows, cols):
    pr, pc = rows - a.shape[0], cols - a.shape[1]
    if pr or pc:
        a = jnp.pad(a, ((0, pr), (0, pc)))
    return a


def _vmem_capacity_bytes():
    try:
        info = pltpu.get_tpu_info()
        cap = getattr(info, "vmem_capacity_bytes", None)
        if cap:
            return int(cap)
    except Exception:
        pass
    return 64 * 1024 * 1024  # conservative: v7x per-TensorCore VMEM


def expert_block(x, w1, b1, w2, b2, layer_scale, *, tm=None, tk=None,
                 use_fast_path=None, vmem_budget=None):
    """EnhancedExpertBlock.forward (eval mode).

    x:           (B, S, H)
    w1:          (4H, H)  fc1 weight, torch-native layout
    b1:          (4H,)
    w2:          (4H, H)  fc2 weight transposed (== torch fc2.weight.T)
    b2:          (H,)
    layer_scale: broadcastable to (1, 1, H)
    Returns (B, S, H).
    """
    B, S, H = x.shape
    H4 = 4 * H
    M = B * S
    assert w1.shape == (H4, H) and w2.shape == (H4, H), (w1.shape, w2.shape)

    Hp = _round_up(H, 128)          # lane-align H
    H4p = 4 * Hp

    x_it = jnp.dtype(x.dtype).itemsize
    w_it = max(jnp.dtype(w1.dtype).itemsize, jnp.dtype(w2.dtype).itemsize)

    # sublane pack: 8 rows for 32-bit dtypes, 16 for sub-32-bit
    sub = 8 if x_it >= 4 else 16
    Ms = _round_up(M, sub)

    # ---- generation-aware VMEM budget ----------------------------------
    cap = _vmem_capacity_bytes()
    vmem_limit = cap * 7 // 8                    # ~56 MiB v7x, ~112 MiB v5e/v6e
    if vmem_budget is None:
        vmem_budget = int(vmem_limit * 0.85)     # headroom for compiler scratch

    # ---- row tile (dtype-aware default; >=2 tiles for v7x megacore) -----
    tm_req = tm if tm is not None else (512 if x_it < 4 else 256)
    tm_eff = min(_round_up(tm_req, sub), Ms)
    if Ms // tm_eff <= 1 and Ms >= 2 * sub:
        tm_eff = _round_up((Ms + 1) // 2, sub)

    # ---- conservative VMEM cost models (assume double-buffered specs) ---
    def fast_bytes(tm_e):
        w_buf = 2 * 2 * H4p * Hp * w_it          # W1 + W2, x2 buffers
        io_buf = 2 * 2 * tm_e * Hp * x_it        # x + out, x2 buffers
        inter = tm_e * H4p * 4                   # f32 (tm, 4H) intermediate
        bias = 2 * (H4p + 2 * Hp) * 4
        return w_buf + io_buf + inter + bias

    def red_bytes(tm_e, tk_e):
        w_buf = 2 * 2 * tk_e * Hp * w_it         # W1 + W2 chunks, x2 buffers
        io_buf = 2 * 2 * tm_e * Hp * x_it        # x + out, x2 buffers
        acc = tm_e * Hp * 4                      # f32 accumulator scratch
        inter = tm_e * tk_e * 4                  # f32 (tm, tk) intermediate
        bias = 2 * (tk_e + 2 * Hp) * 4
        return w_buf + io_buf + acc + inter + bias

    # ---- choose path / tiles --------------------------------------------
    if use_fast_path is None:
        fast = fast_bytes(tm_eff) <= vmem_budget
    else:
        fast = bool(use_fast_path)

    tk_eff = None
    if not fast:
        # divisors of H4p that are multiples of 128, descending
        tk_cands = [H4p // n for n in range(1, H4p // 128 + 1)
                    if H4p % n == 0 and (H4p // n) % 128 == 0]
        if tk is not None:
            tk_r = _round_up(tk, 128)
            fit_user = [c for c in tk_cands if c <= tk_r]
            tk_eff = fit_user[0] if fit_user else tk_cands[-1]
        else:
            while True:
                fitting = [c for c in tk_cands
                           if red_bytes(tm_eff, c) <= vmem_budget]
                if fitting:
                    tk_eff = fitting[0]
                    break
                if tm_eff <= sub:
                    tk_eff = tk_cands[-1]
                    break
                tm_eff = max(sub, _round_up(tm_eff // 2, sub))

    Mp = _round_up(Ms, tm_eff)
    n_row = Mp // tm_eff

    # ---- pad operands (zero padding is numerically benign) --------------
    x2 = _pad2(x.reshape(M, H), Mp, Hp)
    w1p = _pad2(w1, H4p, Hp)
    w2p = _pad2(w2, H4p, Hp)
    b1p = _pad2(b1.reshape(1, H4), 1, H4p)
    b2p = _pad2(b2.reshape(1, H), 1, Hp)
    scalep = _pad2(jnp.broadcast_to(jnp.reshape(layer_scale, (1, -1)), (1, H)),
                   1, Hp)

    nbytes = lambda a: a.size * a.dtype.itemsize
    w_stream = nbytes(w1p) + nbytes(w2p)
    if not fast:
        w_stream *= n_row                        # weights re-streamed per row tile
    cost = pl.CostEstimate(
        flops=2 * 2 * Mp * Hp * H4p,
        transcendentals=Mp * H4p,
        bytes_accessed=(w_stream + nbytes(x2) + nbytes(b1p) + nbytes(b2p)
                        + nbytes(scalep) + Mp * Hp * x_it),
    )

    if fast:
        grid_spec = pltpu.PrefetchScalarGridSpec(
            num_scalar_prefetch=0,
            grid=(n_row,),
            in_specs=[
                pl.BlockSpec((tm_eff, Hp), lambda i: (i, 0)),   # x rows
                pl.BlockSpec((H4p, Hp), lambda i: (0, 0)),      # W1 (resident)
                pl.BlockSpec((1, H4p), lambda i: (0, 0)),       # b1
                pl.BlockSpec((H4p, Hp), lambda i: (0, 0)),      # W2 (resident)
                pl.BlockSpec((1, Hp), lambda i: (0, 0)),        # b2
                pl.BlockSpec((1, Hp), lambda i: (0, 0)),        # layer_scale
            ],
            out_specs=pl.BlockSpec((tm_eff, Hp), lambda i: (i, 0)),
            scratch_shapes=[],
        )
        kernel = _expert_fused_kernel
        dims = ("parallel",)
    else:
        grid_spec = pltpu.PrefetchScalarGridSpec(
            num_scalar_prefetch=0,
            grid=(n_row, H4p // tk_eff),
            in_specs=[
                pl.BlockSpec((tm_eff, Hp), lambda i, k: (i, 0)),  # x rows
                pl.BlockSpec((tk_eff, Hp), lambda i, k: (k, 0)),  # W1 chunk
                pl.BlockSpec((1, tk_eff), lambda i, k: (0, k)),   # b1 chunk
                pl.BlockSpec((tk_eff, Hp), lambda i, k: (k, 0)),  # W2 chunk
                pl.BlockSpec((1, Hp), lambda i, k: (0, 0)),       # b2
                pl.BlockSpec((1, Hp), lambda i, k: (0, 0)),       # layer_scale
            ],
            out_specs=pl.BlockSpec((tm_eff, Hp), lambda i, k: (i, 0)),
            scratch_shapes=[pltpu.VMEM((tm_eff, Hp), jnp.float32)],
        )
        kernel = _expert_kernel
        dims = ("parallel", "arbitrary")

    out = pl.pallas_call(
        kernel,
        out_shape=jax.ShapeDtypeStruct((Mp, Hp), x.dtype),
        grid_spec=grid_spec,
        compiler_params=pltpu.CompilerParams(
            dimension_semantics=dims,
            vmem_limit_bytes=int(vmem_limit),
        ),
        cost_estimate=cost,
    )(x2, w1p, b1p, w2p, b2p, scalep)

    return out[:M, :H].reshape(B, S, H)


def _orthogonal(key, rows, cols, gain):
    """Deterministic orthogonal init matching torch.nn.init.orthogonal_."""
    flat = jax.random.normal(key, (max(rows, cols), min(rows, cols)), jnp.float32)
    q, r = jnp.linalg.qr(flat)
    q = q * jnp.sign(jnp.diagonal(r))
    if rows < cols:
        q = q.T
    return gain * q[:rows, :cols]


def make_params(key, hidden_dim):
    h, h4 = hidden_dim, 4 * hidden_dim
    k1, k2 = jax.random.split(key)
    # torch Linear weights: fc1.weight (4H, H), fc2.weight (H, 4H).
    w1 = _orthogonal(k1, h4, h, math.sqrt(2.0))       # (4H, H), torch-native
    w2 = _orthogonal(k2, h, h4, math.sqrt(2.0)).T     # (4H, H) == fc2.weight.T
    b1 = jnp.zeros((h4,), jnp.float32)
    b2 = jnp.zeros((h,), jnp.float32)
    layer_scale = jnp.full((1, 1, h), 0.1, jnp.float32)
    return w1, b1, w2, b2, layer_scale


def reference(x, w1, b1, w2, b2, layer_scale):
    h = x @ w1.T + b1
    h = 0.5 * h * (1.0 + jax.lax.erf(h / math.sqrt(2.0)))
    y = h @ w2 + b2
    return x + y * layer_scale


if __name__ == "__main__":
    B, S, H = 2, 8, 32
    key = jax.random.PRNGKey(0)
    kx, kp = jax.random.split(key)
    x = jax.random.normal(kx, (B, S, H), jnp.float32)
    w1, b1, w2, b2, layer_scale = make_params(kp, H)

    ref = reference(x, w1, b1, w2, b2, layer_scale)

    # Auto path (resident-weights fast path for this size); exact parity.
    out = jax.block_until_ready(expert_block(x, w1, b1, w2, b2, layer_scale))
    assert out.shape == (B, S, H)
    err = float(jnp.max(jnp.abs(out - ref)))
    assert jnp.allclose(out, ref, atol=1e-4, rtol=1e-4), err

    # Forced reduction (k-tiled accumulator) path; exercises the 2-D grid.
    out_red = jax.block_until_ready(
        expert_block(x, w1, b1, w2, b2, layer_scale, use_fast_path=False, tk=128))
    err_red = float(jnp.max(jnp.abs(out_red - ref)))
    assert jnp.allclose(out_red, ref, atol=1e-4, rtol=1e-4), err_red

    # bf16 fast path: bf16 operands on the MXU, f32 accumulate / epilogue.
    out_bf16 = jax.block_until_ready(
        expert_block(x.astype(jnp.bfloat16), w1.astype(jnp.bfloat16), b1,
                     w2.astype(jnp.bfloat16), b2, layer_scale))
    err_bf = float(jnp.max(jnp.abs(out_bf16.astype(jnp.float32) - ref)))
    assert err_bf < 0.1, err_bf

    print("KERNEL_OK")
</pallas_src>

<mosaic_0001>
module attributes {stable_mosaic.version = 11 : i64} {
  func.func @_expert_fused_kernel(%arg0: i32, %arg1: memref<8x128xf32, #tpu.memory_space<vmem>>, %arg2: memref<512x128xf32, #tpu.memory_space<vmem>>, %arg3: memref<1x512xf32, #tpu.memory_space<vmem>>, %arg4: memref<512x128xf32, #tpu.memory_space<vmem>>, %arg5: memref<1x128xf32, #tpu.memory_space<vmem>>, %arg6: memref<1x128xf32, #tpu.memory_space<vmem>>, %arg7: memref<8x128xf32, #tpu.memory_space<vmem>>) attributes {dimension_semantics = [#tpu.dimension_semantics<parallel>], iteration_bounds = array<i64: 2>, scalar_prefetch = 0 : i64, scratch_operands = 0 : i64, tpu.core_type = #tpu.core_type<tc>, window_params = [{transform_indices = @transform_0, window_bounds = array<i64: 8, 128>}, {pipeline_mode = #tpu.pipeline_mode<synchronous>, transform_indices = @transform_1, window_bounds = array<i64: 512, 128>}, {pipeline_mode = #tpu.pipeline_mode<synchronous>, transform_indices = @transform_2, window_bounds = array<i64: 1, 512>}, {pipeline_mode = #tpu.pipeline_mode<synchronous>, transform_indices = @transform_3, window_bounds = array<i64: 512, 128>}, {pipeline_mode = #tpu.pipeline_mode<synchronous>, transform_indices = @transform_4, window_bounds = array<i64: 1, 128>}, {pipeline_mode = #tpu.pipeline_mode<synchronous>, transform_indices = @transform_5, window_bounds = array<i64: 1, 128>}, {transform_indices = @transform_6, window_bounds = array<i64: 8, 128>}]} {
    %c0 = arith.constant 0 : index
    %c0_0 = arith.constant 0 : index
    %0 = vector.load %arg1[%c0, %c0_0] : memref<8x128xf32, #tpu.memory_space<vmem>>, vector<8x128xf32>
    %c0_1 = arith.constant 0 : index
    %c0_2 = arith.constant 0 : index
    %1 = vector.load %arg2[%c0_1, %c0_2] : memref<512x128xf32, #tpu.memory_space<vmem>>, vector<512x128xf32>
    %c0_3 = arith.constant 0 : index
    %c0_4 = arith.constant 0 : index
    %2 = vector.load %arg4[%c0_3, %c0_4] : memref<512x128xf32, #tpu.memory_space<vmem>>, vector<512x128xf32>
    %cst = arith.constant dense<0.000000e+00> : vector<8x512xf32>
    %3 = tpu.matmul %0, %1, %cst {dimension_numbers = #tpu.dot_dimension_numbers<[1], [1], [0], [0], [0, 0, 1, 0], [], []>} : vector<8x128xf32>, vector<512x128xf32>, vector<8x512xf32> -> vector<8x512xf32>
    %c0_5 = arith.constant 0 : index
    %c0_6 = arith.constant 0 : index
    %4 = vector.load %arg3[%c0_5, %c0_6] : memref<1x512xf32, #tpu.memory_space<vmem>>, vector<1x512xf32>
    %5 = vector.broadcast %4 : vector<1x512xf32> to vector<8x512xf32>
    %6 = arith.addf %3, %5 : vector<8x512xf32>
    %cst_7 = arith.constant 5.000000e-01 : f32
    %7 = vector.broadcast %cst_7 : f32 to vector<8x512xf32>
    %8 = arith.mulf %7, %6 : vector<8x512xf32>
    %cst_8 = arith.constant 0.707106769 : f32
    %9 = vector.broadcast %cst_8 : f32 to vector<8x512xf32>
    %10 = arith.mulf %6, %9 : vector<8x512xf32>
    %11 = math.erf %10 : vector<8x512xf32>
    %cst_9 = arith.constant 1.000000e+00 : f32
    %12 = vector.broadcast %cst_9 : f32 to vector<8x512xf32>
    %13 = arith.addf %12, %11 : vector<8x512xf32>
    %14 = arith.mulf %8, %13 : vector<8x512xf32>
    %cst_10 = arith.constant dense<0.000000e+00> : vector<8x128xf32>
    %15 = tpu.matmul %14, %2, %cst_10 {dimension_numbers = #tpu.dot_dimension_numbers<[1], [0], [0], [1], [0, 0, 1, 1], [], []>} : vector<8x512xf32>, vector<512x128xf32>, vector<8x128xf32> -> vector<8x128xf32>
    %c0_11 = arith.constant 0 : index
    %c0_12 = arith.constant 0 : index
    %16 = vector.load %arg5[%c0_11, %c0_12] : memref<1x128xf32, #tpu.memory_space<vmem>>, vector<1x128xf32>
    %17 = vector.broadcast %16 : vector<1x128xf32> to vector<8x128xf32>
    %18 = arith.addf %15, %17 : vector<8x128xf32>
    %c0_13 = arith.constant 0 : index
    %c0_14 = arith.constant 0 : index
    %19 = vector.load %arg6[%c0_13, %c0_14] : memref<1x128xf32, #tpu.memory_space<vmem>>, vector<1x128xf32>
    %20 = vector.broadcast %19 : vector<1x128xf32> to vector<8x128xf32>
    %21 = arith.mulf %18, %20 : vector<8x128xf32>
    %22 = arith.addf %0, %21 : vector<8x128xf32>
    %c0_15 = arith.constant 0 : index
    %c0_16 = arith.constant 0 : index
    %23 = vector.load %arg7[%c0_15, %c0_16] : memref<8x128xf32, #tpu.memory_space<vmem>>, vector<8x128xf32>
    tpu.vector_store %arg7[%c0_15, %c0_16], %22 {strides = array<i32>} : memref<8x128xf32, #tpu.memory_space<vmem>>, vector<8x128xf32>,
    return
  }
  func.func @transform_0(%arg0: i32) -> (i32, i32) {
    %c0_i32 = arith.constant 0 : i32
    %c0_i32_0 = arith.constant 0 : i32
    return %arg0, %c0_i32 : i32, i32
  }
  func.func @transform_1(%arg0: i32) -> (i32, i32) {
    %c0_i32 = arith.constant 0 : i32
    %c0_i32_0 = arith.constant 0 : i32
    %c0_i32_1 = arith.constant 0 : i32
    return %c0_i32, %c0_i32_0 : i32, i32
  }
  func.func @transform_2(%arg0: i32) -> (i32, i32) {
    %c0_i32 = arith.constant 0 : i32
    %c0_i32_0 = arith.constant 0 : i32
    %c0_i32_1 = arith.constant 0 : i32
    return %c0_i32, %c0_i32_0 : i32, i32
  }
  func.func @transform_3(%arg0: i32) -> (i32, i32) {
    %c0_i32 = arith.constant 0 : i32
    %c0_i32_0 = arith.constant 0 : i32
    %c0_i32_1 = arith.constant 0 : i32
    return %c0_i32, %c0_i32_0 : i32, i32
  }
  func.func @transform_4(%arg0: i32) -> (i32, i32) {
    %c0_i32 = arith.constant 0 : i32
    %c0_i32_0 = arith.constant 0 : i32
    %c0_i32_1 = arith.constant 0 : i32
    return %c0_i32, %c0_i32_0 : i32, i32
  }
  func.func @transform_5(%arg0: i32) -> (i32, i32) {
    %c0_i32 = arith.constant 0 : i32
    %c0_i32_0 = arith.constant 0 : i32
    %c0_i32_1 = arith.constant 0 : i32
    return %c0_i32, %c0_i32_0 : i32, i32
  }
  func.func @transform_6(%arg0: i32) -> (i32, i32) {
    %c0_i32 = arith.constant 0 : i32
    %c0_i32_0 = arith.constant 0 : i32
    return %arg0, %c0_i32 : i32, i32
  }
}

</mosaic_0001>

<bundles_post_ra>
// kernel: tpu_custom_call.1
= control target key start
LH: loop header
LB: loop body
LE: loop exit
PB: predicated region body
PF: predicated region fallthrough
CT: control target
= control target key end

     0   :  { %11 = vsyncpa [#allocation3], 0  ;;  %s1681_s0 = inlined_call_operand.hbm [shape: f32[16,128], index: 0, kind: input, shape index: {}]   ;;  %s1682_s1 = inlined_call_operand.hbm [shape: f32[512,128], index: 1, kind: input, shape index: {}]   ;;  %s1683_s2 = inlined_call_operand.vmem [shape: f32[1,512], index: 2, kind: input, shape index: {}]   ;;  %s1684_s3 = inlined_call_operand.hbm [shape: f32[512,128], index: 3, kind: input, shape index: {}]   ;;  %s1685_s4 = inlined_call_operand.vmem [shape: f32[1,128], index: 4, kind: input, shape index: {}]   ;;  %s1686_s5 = inlined_call_operand.vmem [shape: f32[1,128], index: 5, kind: input, shape index: {}]   ;;  %s1687_s6 = inlined_call_operand.hbm [shape: f32[16,128], index: 6, kind: output, shape index: {}]  }
   0x1   :  { %13 = vsyncpa [#allocation3 + $0x1], 0 }
   0x2   :  { %14 = vsyncpa [#allocation6], 0 }
   0x3   :  { %15 = vsyncpa [#allocation4], 0 }
   0x4   :  { %17 = vsyncpa [#allocation4 + $0x1], 0  ;;  %s1429_s21 = smov 0   ;;  %s1431_s22 = smov 0  }
   0x5   :  { %s1433_s23 = smov 0   ;;  %s1435_s24 = smov 0  }
   0x6 LB: > { %s1450_s25 = sadd.s32 4294967295, %s1386_s24   ;;  %s869_s26 = sadd.s32 4294967294, %s1386_s24   ;;  %s1386_s24 = sphi %s1435_s24, %s1707_s24   ;;  %s1382_s23 = sphi %s1433_s23, %s1706_s23   ;;  %s1378_s22 = sphi %s1431_s22, %s1705_s22   ;;  %s1374_s21 = sphi %s1429_s21, %s1704_s21  }
   0x7   : > { %p43_p0 = scmp.ne.s32.totalorder %s1378_s22, %s1374_s21  ;;  %p1688_p1 = scmp.eq.s32.totalorder %s1450_s25, 0 }
   0x8   : > { %p178_p3 = scmp.eq.s32.totalorder %s869_s26, 1  ;;  %p870_p5 = scmp.ge.s32.totalorder %s1386_s24, 1 }
   0x9   : > { %p1459_p4 = por %p1688_p1, %p43_p0  ;;  %p185_p7 = scmp.lt.s32.totalorder %s1386_s24, 3 }
   0xa   : > { %p1464_p6 = por %p178_p3, %p43_p0  ;;  %s1388_s30 = smov [#allocation5]  }
   0xb   : > { %s1691_s27 = scalar_select %p1459_p4, 1, 0 }
   0xc   : > { %s1692_s28 = scalar_select %p1464_p6, 1, 0 }
   0xd   : > { %p1469_p8 = pnand %p870_p5, %p185_p7  ;;  %s197_s7 = sshll.u32 %s1388_s30, 4  ;;  %s1473_s7 = int_to_ptr.vmem [resolvable:$true] %s197_s7 }
   0xe   : > { %s1389_s9 = smov [#allocation7]   ;;  %s1230_s13 = scalar_lea.hbm %s1682_s1, 8192 }
   0xf   : > { %p1165_p9 = pneg %p1469_p8  ;;  %s213_s10 = sshll.u32 %s1389_s9, 4  ;;  %s1484_s10 = int_to_ptr.vmem [resolvable:$true] %s213_s10 }
  0x10   : > { %p1231_p12 = scmp.ne.s32.totalorder %s1682_s1, %s1230_s13  ;;  %p1237_p5 = scmp.lt.u32.totalorder %s1230_s13, %s1682_s1 }
  0x11   : > { %p1480_p11 = pnand %p1165_p9, %p1688_p1 }
  0x13   : > { %p1232_p13 = pneg %p1480_p11 }
  0x15   : > { %p1233_p0 = pnand %p1232_p13, %p1231_p12 }
  0x17   : > { %p1234_p3 = pneg %p1233_p0 }
  0x19   : > { %p1239_p7 = pnand %p1237_p5, %p1234_p3 }
  0x1b   : > { %1242 = shalt.err (!%p1239_p7)
}
  0x1c   : > { %s1243_s18 = scalar_lea.vmem %s1473_s7, 8192  ;;  %p1251_p2 = scmp.lt.s32.totalorder %s1473_s7, %s1473_s7 }
  0x1d   : > { %p1244_p9 = scmp.ne.s32.totalorder %s1473_s7, %s1243_s18  ;;  %p1252_p12 = scmp.lt.s32.totalorder %s1243_s18, %s1243_s18 }
  0x1f   : > { %p1246_p10 = pnand %p1244_p9, %p1232_p13  ;;  %p1253_p0 = por %p1252_p12, %p1251_p2 }
  0x21   : > { %p1247_p1 = pneg %p1246_p10 }
  0x23   : > { %p1254_p6 = pnand %p1253_p0, %p1247_p1 }
  0x25   : > { %1257 = shalt.err (!%p1254_p6)
}
  0x26   : > { %s1390_s19 = smov 128   ;;  %s1391_s20 = smov 8  }
  0x27   : > { %1168 = dma.hbm_to_vmem [thread:$0]  (!%p1480_p11), %s1682_s1, 8192, %s1473_s7, [#allocation6], %s1390_s19, %s1390_s19, %s1391_s20  }
  0x28   : > { %s1258_s12 = scalar_lea.hbm %s1684_s3, 8192 }
  0x29   : > { %p1259_p2 = scmp.ne.s32.totalorder %s1684_s3, %s1258_s12  ;;  %p1265_p10 = scmp.lt.u32.totalorder %s1258_s12, %s1684_s3 }
  0x2b   : > { %p1261_p1 = pnand %p1259_p2, %p1232_p13 }
  0x2d   : > { %p1262_p6 = pneg %p1261_p1 }
  0x2f   : > { %p1267_p3 = pnand %p1265_p10, %p1262_p6 }
  0x31   : > { %1270 = shalt.err (!%p1267_p3)
}
  0x32   : > { %s1271_s7 = scalar_lea.vmem %s1484_s10, 8192  ;;  %p1279_p12 = scmp.lt.s32.totalorder %s1484_s10, %s1484_s10 }
  0x33   : > { %p1272_p5 = scmp.ne.s32.totalorder %s1484_s10, %s1271_s7  ;;  %p1280_p0 = scmp.lt.s32.totalorder %s1271_s7, %s1271_s7 }
  0x35   : > { %p1274_p7 = pnand %p1272_p5, %p1232_p13  ;;  %p1281_p2 = por %p1280_p0, %p1279_p12 }
  0x37   : > { %p1275_p9 = pneg %p1274_p7 }
  0x39   : > { %p1282_p1 = pnand %p1281_p2, %p1275_p9 }
  0x3b   : > { %1285 = shalt.err (!%p1282_p1)
}
  0x3c   : > { %1171 = dma.hbm_to_vmem [thread:$0]  (!%p1480_p11), %s1684_s3, 8192, %s1484_s10, [#allocation6], %s1390_s19, %s1390_s19, %s1391_s20  }
  0x3d   : > { %s1539_s26 = sadd.s32 1, %s1386_s24   ;;  %s30_s8 = sadd.s32 1, %s1382_s23 }
  0x3e   : > { %s27_s30 = ssub.s32 %s1386_s24, %s1539_s26  ;;  %p37_p13 = scmp.ne.s32.totalorder %s1382_s23, %s1378_s22 }
  0x3f   : > { %p28_p6 = scmp.eq.s32.totalorder %s27_s30, 0  ;;  %p38_p10 = scmp.eq.s32.totalorder %s1386_s24, 0 }
  0x40   : > { %p1695_p3 = scmp.eq.s32.totalorder %s1450_s25, 1  ;;  %p1182_p7 = scmp.lt.s32.totalorder %s1386_s24, 2 }
  0x41   : > { %s1555_s11 = scalar_select %p28_p6, %s1382_s23, %s30_s8  }
  0x42   : > { %p1549_p5 = por %p1695_p3, %p37_p13  ;;  %p39_p9 = por %p38_p10, %p37_p13 }
  0x43   : > { %s233_s12 = sand.u32 1, %s1382_s23   ;;  %s875_s10 = sshll.u32 %s1386_s24, 7 }
  0x44   : > { %s1696_s9 = scalar_select %p1549_p5, 1, 0 }
  0x45   : > { %s874_s13 = sshll.u32 %s233_s12, 3  ;;  %s1562_s14 = scalar_lea.hbm %s1681_s0, %s875_s10 }
  0x46   : > { %s237_s15 = scalar_lea.vmem [#allocation2], %s874_s13  ;;  %p1566_p11 = pnand %p1182_p7, %p39_p9 }
  0x47   : > { %s244_s16 = sshll.u32 %s237_s15, 4  ;;  %s234_s17 = scalar_lea.sflag [#allocation3], %s233_s12  ;;  %s1564_s16 = int_to_ptr.vmem [resolvable:$true] %s244_s16 }
  0x48   : > { %s1286_s18 = scalar_lea.hbm %s1562_s14, 128  ;;  %p1288_p0 = pneg %p1566_p11 }
  0x49   : > { %p1287_p12 = scmp.ne.s32.totalorder %s1562_s14, %s1286_s18  ;;  %s1291_s13 = scalar_lea.hbm %s1681_s0, 256 }
  0x4a   : > { %p1292_p13 = scmp.lt.u32.totalorder %s1562_s14, %s1681_s0  ;;  %p1293_p6 = scmp.lt.u32.totalorder %s1291_s13, %s1286_s18 }
  0x4b   : > { %p1289_p2 = pnand %p1288_p0, %p1287_p12  ;;  %p1295_p3 = scmp.lt.u32.totalorder %s1286_s18, %s1562_s14 }
  0x4c   : > { %p1294_p10 = por %p1293_p6, %p1292_p13 }
  0x4d   : > { %p1290_p1 = pneg %p1289_p2 }
  0x4e   : > { %p1296_p7 = por %p1295_p3, %p1294_p10 }
  0x50   : > { %p1297_p9 = pnand %p1296_p7, %p1290_p1 }
  0x52   : > { %1300 = shalt.err (!%p1297_p9)
}
  0x53   : > { %s1301_s12 = scalar_lea.vmem %s1564_s16, 128  ;;  %s1392_s20 = smov [#allocation2]  }
  0x54   : > { %p1302_p12 = scmp.ne.s32.totalorder %s1564_s16, %s1301_s12  ;;  %s1306_s15 = sshll.u32 %s1392_s20, 4  ;;  %s1307_s15 = int_to_ptr.vmem [resolvable:$false] %s1306_s15 }
  0x55   : > { %s1308_s8 = scalar_lea.vmem %s1307_s15, 256  ;;  %p1309_p4 = scmp.lt.s32.totalorder %s1564_s16, %s1307_s15 }
  0x56   : > { %p1304_p2 = pnand %p1302_p12, %p1288_p0  ;;  %p1310_p13 = scmp.lt.s32.totalorder %s1308_s8, %s1301_s12 }
  0x58   : > { %p1305_p5 = pneg %p1304_p2  ;;  %p1311_p6 = por %p1310_p13, %p1309_p4 }
  0x5a   : > { %p1312_p10 = pnand %p1311_p6, %p1305_p5 }
  0x5c   : > { %1315 = shalt.err (!%p1312_p10)
}
  0x5d   : > { %1175 = dma.hbm_to_vmem [thread:$0]  (!%p1566_p11), %s1562_s14, 128, %s1564_s16, %s234_s17  }
  0x5e   : > { %253 = sbr.rel (%p1469_p8) target bundleno = 644 (0x284), region = 44  ;;  %s1598_s18 = sand.u32 (!%p1469_p8), 1, %s1378_s22  }
  0x5f   : > { %s877_s30 = sshll.u32 (!%p1469_p8), %s1598_s18, 3  ;;  %s256_s13 = scalar_lea.sflag (!%p1469_p8), [#allocation3], %s1598_s18 }
  0x60   : > { %s1604_s10 = scalar_lea.vmem (!%p1469_p8), [#allocation2], %s877_s30  ;;  %p1698_p4 = scmp.ne.s32.totalorder (!%p1469_p8), %s1691_s27, 0 }
  0x65   : > { %1361 = dma.done.wait (%p1698_p4), %s256_s13, 128  }
  0x66   : > { %1363 = vsyncadd (%p1698_p4), %s256_s13, 4294967168  ;;  %p1699_p5 = scmp.eq.s32.totalorder %s1450_s25, 0 }
  0x68   : > { %1365 = dma.done.wait (%p1699_p5), [#allocation6], 16384   ;;  %p1700_p8 = pmov %p1699_p5 }
  0x69   : > { %v313_v0 = vld [vmem:[#allocation5 + $0x80] sm:$0xff]  ;;  %v314_v1 = vld [vmem:[#allocation5 + $0x88] sm:$0xff]  ;;  %v315_v11 = vld [vmem:[#allocation5 + $0x90] sm:$0xff]  ;;  %s884_s19 = sshll.u32 %s1450_s25, 7  ;;  %s295_s12 = scalar_lea.vmem [#allocation8], %s877_s30 }
  0x6a   : > { %1367 = vsyncadd (%p1700_p8), [#allocation6], 4294950912  ;;  %v345_v2 = vld [vmem:[#allocation5 + $0x180] sm:$0xff]  ;;  %v1025_v3 = vpack.c.bf16 %v314_v1, %v313_v0  ;;  %v346_v4 = vld [vmem:[#allocation5 + $0x188] sm:$0xff]  ;;  %s780_s20 = sshll.u32 %s295_s12, 4  ;;  %s1637_s13 = scalar_lea.hbm %s1687_s6, %s884_s19  ;;  %s1639_s20 = int_to_ptr.vmem [resolvable:$true] %s780_s20 }
  0x6b   : > { %v297_v5 = vld [vmem:[#allocation5] sm:$0xff]  ;;  %v298_v6 = vld [vmem:[#allocation5 + $0x8] sm:$0xff]  ;;  %v1057_v7 = vpack.c.bf16 %v346_v4, %v345_v2  ;;  %v316_v13 = vld [vmem:[#allocation5 + $0x98] sm:$0xff]  ;;  %s1316_s27 = scalar_lea.vmem %s1639_s20, 128  ;;  %p1701_p0 = scmp.ne.s32.totalorder %s1696_s9, 0 }
  0x6c   : > { %v1027_v8 = vpack.c.bf16 %v298_v6, %v297_v5  ;;  %v329_v9 = vld [vmem:[#allocation5 + $0x100] sm:$0xff]  ;;  %v330_v10 = vld [vmem:[#allocation5 + $0x108] sm:$0xff]  ;;  %1026 = vmatprep.subr.bf16.mxu0 %v1025_v3  ;;  %v347_v14 = vld [vmem:[#allocation5 + $0x190] sm:$0xff]  ;;  %v1029_v16 = vpack.c.bf16 %v316_v13, %v315_v11  ;;  %p1317_p11 = scmp.ne.s32.totalorder %s1639_s20, %s1316_s27  ;;  %s1393_s25 = smov [#allocation8]  }
  0x6d   : > { %v1059_v12 = vpack.c.bf16 %v330_v10, %v329_v9  ;;  %v348_v15 = vld [vmem:[#allocation5 + $0x198] sm:$0xff]  ;;  %1058 = vmatprep.subr.bf16.mxu1 %v1057_v7  ;;  %v299_v18 = vld [vmem:[#allocation5 + $0x10] sm:$0xff]  ;;  %v317_v22 = vld [vmem:[#allocation5 + $0xa0] sm:$0xff]  ;;  %s1320_s30 = sshll.u32 %s1393_s25, 4  ;;  %s1321_s30 = int_to_ptr.vmem [resolvable:$false] %s1320_s30 }
  0x6e   : > { %1028 = vmatpush3.bf16.xpose.msra.mxu0 %v1027_v8  ;;  %v1061_v17 = vpack.c.bf16 %v348_v15, %v347_v14  ;;  %v300_v19 = vld [vmem:[#allocation5 + $0x18] sm:$0xff]  ;;  %v331_v20 = vld [vmem:[#allocation5 + $0x110] sm:$0xff]  ;;  %v318_v23 = vld [vmem:[#allocation5 + $0xa8] sm:$0xff]  ;;  %p1318_p1 = pnand %p1317_p11, %p1701_p0  ;;  %s1322_s29 = scalar_lea.vmem %s1321_s30, 256 }
  0x6f   : > { %1060 = vmatpush3.bf16.xpose.msra.mxu1 %v1059_v12  ;;  %1030 = vmatprep.subr.bf16.mxu0 %v1029_v16  ;;  %v332_v21 = vld [vmem:[#allocation5 + $0x118] sm:$0xff]  ;;  %v349_v24 = vld [vmem:[#allocation5 + $0x1a0] sm:$0xff]  ;;  %v350_v25 = vld [vmem:[#allocation5 + $0x1a8] sm:$0xff]  ;;  %v1031_v26 = vpack.c.bf16 %v300_v19, %v299_v18  ;;  %v1033_v28 = vpack.c.bf16 %v318_v23, %v317_v22  ;;  %p1323_p7 = scmp.lt.s32.totalorder %s1639_s20, %s1321_s30  ;;  %p1324_p9 = scmp.lt.s32.totalorder %s1322_s29, %s1316_s27 }
  0x70   : > { %1062 = vmatprep.subr.bf16.mxu1 %v1061_v17  ;;  %v1063_v27 = vpack.c.bf16 %v332_v21, %v331_v20  ;;  %v1065_v29 = vpack.c.bf16 %v350_v25, %v349_v24  ;;  %v301_v30 = vld [vmem:[#allocation5 + $0x20] sm:$0xff]  ;;  %v302_v31 = vld [vmem:[#allocation5 + $0x28] sm:$0xff]  ;;  %v319_v34 = vld [vmem:[#allocation5 + $0xb0] sm:$0xff]  ;;  %p1319_p3 = pneg %p1318_p1 }
  0x71   : > { %v333_v32 = vld [vmem:[#allocation5 + $0x120] sm:$0xff]  ;;  %v334_v33 = vld [vmem:[#allocation5 + $0x128] sm:$0xff]  ;;  %v320_v35 = vld [vmem:[#allocation5 + $0xb8] sm:$0xff]  ;;  %v1035_v38 = vpack.c.bf16 %v302_v31, %v301_v30  ;;  %p1325_p12 = por %p1324_p9, %p1323_p7 }
  0x72   : > { %v351_v36 = vld [vmem:[#allocation5 + $0x1b0] sm:$0xff]  ;;  %v352_v37 = vld [vmem:[#allocation5 + $0x1b8] sm:$0xff]  ;;  %v1067_v39 = vpack.c.bf16 %v334_v33, %v333_v32  ;;  %v1037_v40 = vpack.c.bf16 %v320_v35, %v319_v34  ;;  %v321_v47 = vld [vmem:[#allocation5 + $0xc0] sm:$0xff] }
  0x73   : > { %v1069_v41 = vpack.c.bf16 %v352_v37, %v351_v36  ;;  %v303_v42 = vld [vmem:[#allocation5 + $0x30] sm:$0xff]  ;;  %v304_v43 = vld [vmem:[#allocation5 + $0x38] sm:$0xff]  ;;  %v322_v48 = vld [vmem:[#allocation5 + $0xc8] sm:$0xff]  ;;  %p1326_p2 = pnand %p1325_p12, %p1319_p3 }
  0x74   : > { %v335_v44 = vld [vmem:[#allocation5 + $0x130] sm:$0xff]  ;;  %v336_v46 = vld [vmem:[#allocation5 + $0x138] sm:$0xff]  ;;  %v353_v49 = vld [vmem:[#allocation5 + $0x1c0] sm:$0xff]  ;;  %v1039_v51 = vpack.c.bf16 %v304_v43, %v303_v42  ;;  %v1041_v53 = vpack.c.bf16 %v322_v48, %v321_v47 }
  0x75   : > { %v1615_v45 = vld [vmem:[%s1604_s10] sm:$0xff]  ;;  %v354_v50 = vld [vmem:[#allocation5 + $0x1c8] sm:$0xff]  ;;  %v1071_v52 = vpack.c.bf16 %v336_v46, %v335_v44  ;;  %v305_v55 = vld [vmem:[#allocation5 + $0x40] sm:$0xff]  ;;  %s767_s10 = scalar_lea.sflag [#allocation4], %s1598_s18 }
  0x76   : > { %1032 = vmatpush3.bf16.xpose.msra.mxu0 %v1031_v26  ;;  %919 = vmatprep.mubr.f32.mxu0 %v1615_v45  ;;  %v1073_v54 = vpack.c.bf16 %v354_v50, %v353_v49  ;;  %v306_v56 = vld [vmem:[#allocation5 + $0x48] sm:$0xff]  ;;  %v337_v57 = vld [vmem:[#allocation5 + $0x140] sm:$0xff]  ;;  %v323_v59 = vld [vmem:[#allocation5 + $0xd0] sm:$0xff] }
  0x77   : > { %1064 = vmatpush3.bf16.xpose.msra.mxu1 %v1063_v27  ;;  %1034 = vmatprep.subr.bf16.mxu0 %v1033_v28  ;;  %v338_v58 = vld [vmem:[#allocation5 + $0x148] sm:$0xff]  ;;  %v324_v60 = vld [vmem:[#allocation5 + $0xd8] sm:$0xff]  ;;  %v355_v61 = vld [vmem:[#allocation5 + $0x1d0] sm:$0xff]  ;;  %v1043_v63 = vpack.c.bf16 %v306_v56, %v305_v55 }
  0x78   : > { %1066 = vmatprep.subr.bf16.mxu1 %v1065_v29  ;;  %953 = vmatprep.mubr.f32.mxu1 %v1615_v45  ;;  %v356_v62 = vld [vmem:[#allocation5 + $0x1d8] sm:$0xff]  ;;  %v1075_v0 = vpack.c.bf16 %v338_v58, %v337_v57  ;;  %v1045_v1 = vpack.c.bf16 %v324_v60, %v323_v59  ;;  %v307_v3 = vld [vmem:[#allocation5 + $0x50] sm:$0xff]  ;;  %v325_v7 = vld [vmem:[#allocation5 + $0xe0] sm:$0xff] }
  0x79   : > { %v1077_v2 = vpack.c.bf16 %v356_v62, %v355_v61  ;;  %v308_v4 = vld [vmem:[#allocation5 + $0x58] sm:$0xff]  ;;  %v339_v5 = vld [vmem:[#allocation5 + $0x150] sm:$0xff]  ;;  %v326_v8 = vld [vmem:[#allocation5 + $0xe8] sm:$0xff] }
  0x7a   : > { %v340_v6 = vld [vmem:[#allocation5 + $0x158] sm:$0xff]  ;;  %v357_v9 = vld [vmem:[#allocation5 + $0x1e0] sm:$0xff]  ;;  %v358_v10 = vld [vmem:[#allocation5 + $0x1e8] sm:$0xff]  ;;  %v1047_v11 = vpack.c.bf16 %v308_v4, %v307_v3  ;;  %v1049_v13 = vpack.c.bf16 %v326_v8, %v325_v7 }
  0x7b   : > { %v1079_v12 = vpack.c.bf16 %v340_v6, %v339_v5  ;;  %v1081_v14 = vpack.c.bf16 %v358_v10, %v357_v9  ;;  %v309_v15 = vld [vmem:[#allocation5 + $0x60] sm:$0xff]  ;;  %v310_v16 = vld [vmem:[#allocation5 + $0x68] sm:$0xff]  ;;  %v327_v19 = vld [vmem:[#allocation5 + $0xf0] sm:$0xff] }
  0x7c   : > { %v341_v17 = vld [vmem:[#allocation5 + $0x160] sm:$0xff]  ;;  %v342_v18 = vld [vmem:[#allocation5 + $0x168] sm:$0xff]  ;;  %v328_v20 = vld [vmem:[#allocation5 + $0xf8] sm:$0xff]  ;;  %v1051_v23 = vpack.c.bf16 %v310_v16, %v309_v15 }
  0x7d   : > { %v359_v21 = vld [vmem:[#allocation5 + $0x1f0] sm:$0xff]  ;;  %v360_v22 = vld [vmem:[#allocation5 + $0x1f8] sm:$0xff]  ;;  %v1083_v24 = vpack.c.bf16 %v342_v18, %v341_v17  ;;  %v1053_v25 = vpack.c.bf16 %v328_v20, %v327_v19  ;;  %v377_v31 = vld [vmem:[#allocation7 + $0x80] sm:$0xff] }
  0x7e   : > { %1036 = vmatpush3.bf16.xpose.msra.mxu0 %v1035_v38  ;;  %v1085_v26 = vpack.c.bf16 %v360_v22, %v359_v21  ;;  %v311_v27 = vld [vmem:[#allocation5 + $0x70] sm:$0xff]  ;;  %v312_v28 = vld [vmem:[#allocation5 + $0x78] sm:$0xff]  ;;  %v378_v32 = vld [vmem:[#allocation7 + $0x88] sm:$0xff] }
  0x7f   : > { %1068 = vmatpush3.bf16.xpose.msra.mxu1 %v1067_v39  ;;  %1038 = vmatprep.subr.bf16.mxu0 %v1037_v40  ;;  %v343_v29 = vld [vmem:[#allocation5 + $0x170] sm:$0xff]  ;;  %v344_v30 = vld [vmem:[#allocation5 + $0x178] sm:$0xff]  ;;  %v409_v33 = vld [vmem:[#allocation7 + $0x180] sm:$0xff]  ;;  %v1055_v35 = vpack.c.bf16 %v312_v28, %v311_v27  ;;  %v1089_v37 = vpack.c.bf16 %v378_v32, %v377_v31 }
  0x80   : > { %1070 = vmatprep.subr.bf16.mxu1 %v1069_v41  ;;  %v410_v34 = vld [vmem:[#allocation7 + $0x188] sm:$0xff]  ;;  %v1087_v36 = vpack.c.bf16 %v344_v30, %v343_v29  ;;  %v361_v39 = vld [vmem:[#allocation7] sm:$0xff]  ;;  %v379_v43 = vld [vmem:[#allocation7 + $0x90] sm:$0xff] }
  0x81   : > { %v1121_v38 = vpack.c.bf16 %v410_v34, %v409_v33  ;;  %v362_v40 = vld [vmem:[#allocation7 + $0x8] sm:$0xff]  ;;  %v393_v41 = vld [vmem:[#allocation7 + $0x100] sm:$0xff]  ;;  %v380_v44 = vld [vmem:[#allocation7 + $0x98] sm:$0xff] }
  0x82   : > { %v394_v42 = vld [vmem:[#allocation7 + $0x108] sm:$0xff]  ;;  %v411_v46 = vld [vmem:[#allocation7 + $0x190] sm:$0xff]  ;;  %v412_v47 = vld [vmem:[#allocation7 + $0x198] sm:$0xff]  ;;  %v1091_v48 = vpack.c.bf16 %v362_v40, %v361_v39  ;;  %v1093_v50 = vpack.c.bf16 %v380_v44, %v379_v43 }
  0x83   : > { %v1123_v49 = vpack.c.bf16 %v394_v42, %v393_v41  ;;  %v396_v55 = vld [vmem:[#allocation7 + $0x118] sm:$0xff]  ;;  %v381_v56 = vld [vmem:[#allocation7 + $0xa0] sm:$0xff]  ;;  %v382_v57 = vld [vmem:[#allocation7 + $0xa8] sm:$0xff] }
  0x84   : > { %v413_v58 = vld [vmem:[#allocation7 + $0x1a0] sm:$0xff]  ;;  %v414_v59 = vld [vmem:[#allocation7 + $0x1a8] sm:$0xff]  ;;  %v1097_v62 = vpack.c.bf16 %v382_v57, %v381_v56  ;;  %v383_v6 = vld [vmem:[#allocation7 + $0xb0] sm:$0xff] }
  0x85   : > { %v398_v3 = vld [vmem:[#allocation7 + $0x128] sm:$0xff]  ;;  %v384_v7 = vld [vmem:[#allocation7 + $0xb8] sm:$0xff]  ;;  %v415_v8 = vld [vmem:[#allocation7 + $0x1b0] sm:$0xff] }
  0x86   : > { %1040 = vmatpush3.bf16.xpose.msra.mxu0 %v1039_v51  ;;  %v363_v51 = vld [vmem:[#allocation7 + $0x10] sm:$0xff]  ;;  %v1101_v9 = vpack.c.bf16 %v384_v7, %v383_v6  ;;  %v416_v10 = vld [vmem:[#allocation7 + $0x1b8] sm:$0xff]  ;;  %v385_v18 = vld [vmem:[#allocation7 + $0xc0] sm:$0xff] }
  0x87   : > { %1072 = vmatpush3.bf16.xpose.msra.mxu1 %v1071_v52  ;;  %1042 = vmatprep.subr.bf16.mxu0 %v1041_v53  ;;  %v364_v52 = vld [vmem:[#allocation7 + $0x18] sm:$0xff]  ;;  %v395_v53 = vld [vmem:[#allocation7 + $0x110] sm:$0xff]  ;;  %v386_v19 = vld [vmem:[#allocation7 + $0xc8] sm:$0xff] }
  0x88   : > { %1074 = vmatprep.subr.bf16.mxu1 %v1073_v54  ;;  %v1125_v54 = vpack.c.bf16 %v412_v47, %v411_v46  ;;  %v1095_v60 = vpack.c.bf16 %v364_v52, %v363_v51  ;;  %v1127_v61 = vpack.c.bf16 %v396_v55, %v395_v53  ;;  %v399_v15 = vld [vmem:[#allocation7 + $0x130] sm:$0xff]  ;;  %v400_v16 = vld [vmem:[#allocation7 + $0x138] sm:$0xff]  ;;  %v417_v20 = vld [vmem:[#allocation7 + $0x1c0] sm:$0xff]  ;;  %v1105_v21 = vpack.c.bf16 %v386_v19, %v385_v18 }
  0x89   : > { %v1135_v17 = vpack.c.bf16 %v400_v16, %v399_v15  ;;  %v418_v22 = vld [vmem:[#allocation7 + $0x1c8] sm:$0xff]  ;;  %v401_v27 = vld [vmem:[#allocation7 + $0x140] sm:$0xff]  ;;  %v387_v30 = vld [vmem:[#allocation7 + $0xd0] sm:$0xff] }
  0x8a   : > { %v402_v28 = vld [vmem:[#allocation7 + $0x148] sm:$0xff]  ;;  %v388_v31 = vld [vmem:[#allocation7 + $0xd8] sm:$0xff]  ;;  %v419_v32 = vld [vmem:[#allocation7 + $0x1d0] sm:$0xff] }
  0x8b   : > { %v1139_v29 = vpack.c.bf16 %v402_v28, %v401_v27  ;;  %v1109_v33 = vpack.c.bf16 %v388_v31, %v387_v30  ;;  %v420_v34 = vld [vmem:[#allocation7 + $0x1d8] sm:$0xff]  ;;  %v403_v39 = vld [vmem:[#allocation7 + $0x150] sm:$0xff]  ;;  %v389_v42 = vld [vmem:[#allocation7 + $0xe0] sm:$0xff] }
  0x8c   : > { %v404_v40 = vld [vmem:[#allocation7 + $0x158] sm:$0xff]  ;;  %v390_v43 = vld [vmem:[#allocation7 + $0xe8] sm:$0xff]  ;;  %v421_v44 = vld [vmem:[#allocation7 + $0x1e0] sm:$0xff] }
  0x8d   : > { %v1143_v41 = vpack.c.bf16 %v404_v40, %v403_v39  ;;  %v1113_v46 = vpack.c.bf16 %v390_v43, %v389_v42  ;;  %v422_v47 = vld [vmem:[#allocation7 + $0x1e8] sm:$0xff]  ;;  %v405_v52 = vld [vmem:[#allocation7 + $0x160] sm:$0xff]  ;;  %v391_v55 = vld [vmem:[#allocation7 + $0xf0] sm:$0xff] }
  0x8e   : > { %1044 = vmatpush3.bf16.xpose.msra.mxu0 %v1043_v63  ;;  %v365_v63 = vld [vmem:[#allocation7 + $0x20] sm:$0xff]  ;;  %v406_v53 = vld [vmem:[#allocation7 + $0x168] sm:$0xff]  ;;  %v392_v56 = vld [vmem:[#allocation7 + $0xf8] sm:$0xff] }
  0x8f   : > { %1076 = vmatpush3.bf16.xpose.msra.mxu1 %v1075_v0  ;;  %1046 = vmatprep.subr.bf16.mxu0 %v1045_v1  ;;  %v366_v0 = vld [vmem:[#allocation7 + $0x28] sm:$0xff]  ;;  %v1129_v1 = vpack.c.bf16 %v414_v59, %v413_v58  ;;  %v423_v57 = vld [vmem:[#allocation7 + $0x1f0] sm:$0xff]  ;;  %v1117_v58 = vpack.c.bf16 %v392_v56, %v391_v55  ;;  %v424_v59 = vld [vmem:[#allocation7 + $0x1f8] sm:$0xff] }
  0x90   : > { %1078 = vmatprep.subr.bf16.mxu1 %v1077_v2  ;;  %v397_v2 = vld [vmem:[#allocation7 + $0x120] sm:$0xff]  ;;  %v1099_v4 = vpack.c.bf16 %v366_v0, %v365_v63  ;;  %v407_v0 = vld [vmem:[#allocation7 + $0x170] sm:$0xff] }
  0x91   : > { %v1131_v5 = vpack.c.bf16 %v398_v3, %v397_v2  ;;  %v427_v3 = vlaneseq  ;;  %v425_v6 = vld [vmem:[%s1683_s2] sm:$0xf] }
  0x96   : > { %1048 = vmatpush3.bf16.xpose.msra.mxu0 %v1047_v11  ;;  %v367_v11 = vld [vmem:[#allocation7 + $0x30] sm:$0xff] }
  0x97   : > { %1080 = vmatpush3.bf16.xpose.msra.mxu1 %v1079_v12  ;;  %1050 = vmatprep.subr.bf16.mxu0 %v1049_v13  ;;  %v368_v12 = vld [vmem:[#allocation7 + $0x38] sm:$0xff]  ;;  %v1133_v13 = vpack.c.bf16 %v416_v10, %v415_v8 }
  0x98   : > { %1082 = vmatprep.subr.bf16.mxu1 %v1081_v14  ;;  %v1103_v14 = vpack.c.bf16 %v368_v12, %v367_v11 }
  0x9e   : > { %1052 = vmatpush3.bf16.xpose.msra.mxu0 %v1051_v23  ;;  %v369_v23 = vld [vmem:[#allocation7 + $0x40] sm:$0xff] }
  0x9f   : > { %1084 = vmatpush3.bf16.xpose.msra.mxu1 %v1083_v24  ;;  %1054 = vmatprep.subr.bf16.mxu0 %v1053_v25  ;;  %v370_v24 = vld [vmem:[#allocation7 + $0x48] sm:$0xff]  ;;  %v1137_v25 = vpack.c.bf16 %v418_v22, %v417_v20 }
  0xa0   : > { %1086 = vmatprep.subr.bf16.mxu1 %v1085_v26  ;;  %v1107_v26 = vpack.c.bf16 %v370_v24, %v369_v23 }
  0xa6   : > { %1056 = vmatpush3.bf16.xpose.msra.mxu0 %v1055_v35  ;;  %v371_v35 = vld [vmem:[#allocation7 + $0x50] sm:$0xff] }
  0xa7   : > { %1088 = vmatpush3.bf16.xpose.msra.mxu1 %v1087_v36  ;;  %1090 = vmatprep.subr.bf16.mxu0 %v1089_v37  ;;  %v372_v36 = vld [vmem:[#allocation7 + $0x58] sm:$0xff]  ;;  %v1141_v37 = vpack.c.bf16 %v420_v34, %v419_v32 }
  0xa8   : > { %1122 = vmatprep.subr.bf16.mxu1 %v1121_v38  ;;  %v1111_v38 = vpack.c.bf16 %v372_v36, %v371_v35 }
  0xad   : > { %920 = vmatmul.mubr.f32.vlgmr.msra.gmra.mrb[0].mxu0 %v1615_v45 }
  0xae   : > { %954 = vmatmul.mubr.f32.vlgmr.msra.gmra.mrb[0].mxu1 %v1615_v45  ;;  %1092 = vmatpush3.bf16.msra.mxu0 %v1091_v48  ;;  %v373_v48 = vld [vmem:[#allocation7 + $0x60] sm:$0xff] }
  0xaf   : > { %1124 = vmatpush3.bf16.msra.mxu1 %v1123_v49  ;;  %1094 = vmatprep.subr.bf16.mxu0 %v1093_v50  ;;  %v374_v49 = vld [vmem:[#allocation7 + $0x68] sm:$0xff]  ;;  %v1145_v50 = vpack.c.bf16 %v422_v47, %v421_v44  ;;  %v881_v44 = vld [vmem:[%s1685_s4] ss:$0 sm:$0xff] }
  0xb0   : > { %1126 = vmatprep.subr.bf16.mxu1 %v1125_v54  ;;  %v1115_v51 = vpack.c.bf16 %v374_v49, %v373_v48  ;;  %v1147_v54 = vpack.c.bf16 %v406_v53, %v405_v52 }
  0xb2   : > { %1096 = vmatpush3.bf16.msra.mxu0 %v1095_v60  ;;  %v375_v60 = vld [vmem:[#allocation7 + $0x70] sm:$0xff] }
  0xb3   : > { %1128 = vmatpush3.bf16.msra.mxu1 %v1127_v61  ;;  %1098 = vmatprep.subr.bf16.mxu0 %v1097_v62  ;;  %v376_v61 = vld [vmem:[#allocation7 + $0x78] sm:$0xff]  ;;  %v1149_v62 = vpack.c.bf16 %v424_v59, %v423_v57 }
  0xb4   : > { %1130 = vmatprep.subr.bf16.mxu1 %v1129_v1  ;;  %v1119_v63 = vpack.c.bf16 %v376_v61, %v375_v60  ;;  %v408_v1 = vld [vmem:[#allocation7 + $0x178] sm:$0xff] }
  0xb5   : > { %v1151_v2 = vpack.c.bf16 %v408_v1, %v407_v0 }
  0xb6   : > { %1100 = vmatpush3.bf16.msra.mxu0 %v1099_v4  ;;  %v428_v4 = vshrl.u32 %v427_v3, 7 }
  0xb7   : > { %1132 = vmatpush3.bf16.msra.mxu1 %v1131_v5  ;;  %1102 = vmatprep.subr.bf16.mxu0 %v1101_v9 }
  0xb8   : > { %1134 = vmatprep.subr.bf16.mxu1 %v1133_v13  ;;  %v429_v5 = vsub.s32 0, %v428_v4  ;;  %v437_v7 = vsub.s32 2, %v428_v4  ;;  %v433_v8 = vsub.s32 1, %v428_v4  ;;  %v441_v9 = vsub.s32 3, %v428_v4 }
  0xba   : > { %1104 = vmatpush3.bf16.msra.mxu0 %v1103_v14  ;;  %v430_v10 = vrot.slane %v425_v6, %v429_v5  ;;  %v438_v11 = vrot.slane %v425_v6, %v437_v7  ;;  %v434_v12 = vrot.slane %v425_v6, %v433_v8  ;;  %v442_v13 = vrot.slane %v425_v6, %v441_v9 }
  0xbb   : > { %1136 = vmatpush3.bf16.msra.mxu1 %v1135_v17  ;;  %1106 = vmatprep.subr.bf16.mxu0 %v1105_v21 }
  0xbc   : > { %1138 = vmatprep.subr.bf16.mxu1 %v1137_v25 }
  0xbe   : > { %1108 = vmatpush3.bf16.msra.mxu0 %v1107_v26 }
  0xbf   : > { %1140 = vmatpush3.bf16.msra.mxu1 %v1139_v29  ;;  %1110 = vmatprep.subr.bf16.mxu0 %v1109_v33 }
  0xc0   : > { %1142 = vmatprep.subr.bf16.mxu1 %v1141_v37 }
  0xc2   : > { %1112 = vmatpush3.bf16.msra.mxu0 %v1111_v38 }
  0xc3   : > { %1144 = vmatpush3.bf16.msra.mxu1 %v1143_v41  ;;  %1114 = vmatprep.subr.bf16.mxu0 %v1113_v46 }
  0xc4   : > { %1146 = vmatprep.subr.bf16.mxu1 %v1145_v50 }
  0xc6   : > { %1116 = vmatpush3.bf16.msra.mxu0 %v1115_v51  ;;  %v882_v51 = vld [vmem:[%s1686_s5] ss:$0 sm:$0xff] }
  0xc7   : > { %1148 = vmatpush3.bf16.msra.mxu1 %v1147_v54  ;;  %1118 = vmatprep.subr.bf16.mxu0 %v1117_v58 }
  0xc8   : > { %1150 = vmatprep.subr.bf16.mxu1 %v1149_v62 }
  0xca   : > { %1120 = vmatpush3.bf16.msra.mxu0 %v1119_v63 }
  0xcb   : > { %1152 = vmatpush3.bf16.msra.mxu1 %v1151_v2 }
 0x180   : > { %v513_v14 = vpop.f32.mrb[0].mxu0 }
 0x181   : > { %v514_v15 = vadd.f32 %v513_v14, %v430_v10  ;;  %v584_v16 = vpop.f32.mrb[0].mxu1  ;;  %v515_v17 = vpop.f32.mrb[1].mxu0 }
 0x182   : > { %v585_v18 = vadd.f32 %v584_v16, %v438_v11  ;;  %v516_v19 = vadd.f32 %v515_v17, %v434_v12  ;;  %v586_v20 = vpop.f32.mrb[1].mxu1 }
 0x183   : > { %v593_v21 = vmul.f32 0.70710677, %v514_v15  ;;  %v587_v22 = vadd.f32 %v586_v20, %v442_v13  ;;  %v589_v34 = vmul.f32 0.5, %v514_v15 }
 0x184   : > { %v595_v23 = vmul.f32 0.70710677, %v585_v18  ;;  %v594_v24 = vmul.f32 0.70710677, %v516_v19  ;;  %v590_v32 = vmul.f32 0.5, %v516_v19  ;;  %v591_v37 = vmul.f32 0.5, %v585_v18 }
 0x185   : > { %1222 = verf.f32 %v593_v21  ;;  %v596_v25 = vmul.f32 0.70710677, %v587_v22  ;;  %v592_v35 = vmul.f32 0.5, %v587_v22 }
 0x186   : > { %1224 = verf.f32 %v595_v23 }
 0x187   : > { %1226 = verf.f32 %v594_v24 }
 0x188   : > { %1228 = verf.f32 %v596_v25 }
 0x18f   : > { %v1223_v26 = vpop.eup %1222 }
 0x190   : > { %v1225_v27 = vpop.eup %1224  ;;  %v601_v29 = vadd.f32 1.0, %v1223_v26 }
 0x191   : > { %v1227_v28 = vpop.eup %1226  ;;  %v603_v31 = vadd.f32 1.0, %v1225_v27 }
 0x192   : > { %v1229_v30 = vpop.eup %1228  ;;  %v602_v33 = vadd.f32 1.0, %v1227_v28  ;;  %v605_v39 = vmul.f32 %v601_v29, %v589_v34 }
 0x193   : > { %v604_v36 = vadd.f32 1.0, %v1229_v30  ;;  %v607_v41 = vmul.f32 %v603_v31, %v591_v37 }
 0x194   : > { %v606_v38 = vmul.f32 %v602_v33, %v590_v32 }
 0x195   : > { %v608_v40 = vmul.f32 %v604_v36, %v592_v35 }
 0x196   : > { %680 = vmatprep.mubr.f32.mxu0 %v606_v38 }
 0x197   : > { %750 = vmatprep.mubr.f32.mxu1 %v608_v40  ;;  %681 = vmatmul.mubr.f32.vlgmr.msra.gmra.mrb[2].mxu0 %v605_v39 }
 0x198   : > { %751 = vmatmul.mubr.f32.vlgmr.msra.gmra.mrb[2].mxu1 %v607_v41 }
 0x26a   : > { %v987_v42 = vpop.f32.mrb[2].mxu0 }
 0x26b   : > { %v1022_v43 = vpop.f32.mrb[2].mxu1  ;;  %v988_v46 = vpop.f32.mrb[3].mxu0 }
 0x26c   : > { %v989_v47 = vadd.f32 %v988_v46, %v987_v42  ;;  %v1023_v48 = vpop.f32.mrb[3].mxu1 }
 0x26d   : > { %v1024_v49 = vadd.f32 %v1023_v48, %v1022_v43 }
 0x26e   : > { %v683_v50 = vadd.f32 %v989_v47, %v881_v44 }
 0x270   : > { %v753_v52 = vadd.f32 %v1024_v49, %v683_v50 }
 0x272   : > { %v763_v53 = vmul.f32 %v882_v51, %v753_v52 }
 0x274   : > { %v764_v54 = vadd.f32 %v763_v53, %v1615_v45 }
 0x276   : > { %765 = vst [vmem:[%s295_s12] sm:$0xff] %v764_v54 }
 0x277   : > { %1329 = shalt.err (!%p1326_p2)
}
 0x278   : > { %s1330_s18 = scalar_lea.hbm %s1637_s13, 128  ;;  %s1334_s7 = scalar_lea.hbm %s1687_s6, 256 }
 0x279   : > { %p1331_p13 = scmp.ne.s32.totalorder %s1637_s13, %s1330_s18  ;;  %p1335_p4 = scmp.lt.u32.totalorder %s1637_s13, %s1687_s6 }
 0x27a   : > { %p1336_p5 = scmp.lt.u32.totalorder %s1334_s7, %s1330_s18  ;;  %p1338_p11 = scmp.lt.u32.totalorder %s1330_s18, %s1637_s13 }
 0x27b   : > { %p1332_p6 = pnand %p1331_p13, %p1701_p0 }
 0x27c   : > { %p1337_p8 = por %p1336_p5, %p1335_p4 }
 0x27d   : > { %p1333_p10 = pneg %p1332_p6 }
 0x27e   : > { %p1339_p1 = por %p1338_p11, %p1337_p8 }
 0x280   : > { %p1340_p3 = pnand %p1339_p1, %p1333_p10 }
 0x282   : > { %1343 = shalt.err (!%p1340_p3)
}
 0x283   : > { %1163 = dma.vmem_to_hbm [thread:$0]  (%p1701_p0), %s1639_s20, 128, %s1637_s13, %s767_s10  }
 0x284 PF: > { %s792_s12 = sand.u32 1, %s1374_s21   ;;  %p1702_p7 = scmp.ne.s32.totalorder %s1692_s28, 0 }
 0x285   : > { %p1703_p9 = scmp.ge.s32.totalorder %s1386_s24, 2  ;;  %s793_s15 = scalar_lea.sflag [#allocation4], %s792_s12 }
 0x287   : > { %p1177_p12 = pnand %p1703_p9, %p1702_p7 }
 0x289   : > { %1369 = dma.done.wait (!%p1177_p12), %s793_s15, 128  }
 0x28a   : > { %1371 = vsyncadd (!%p1177_p12), %s793_s15, 4294967168  ;;  %p20_p2 = scmp.ge.s32.totalorder %s1539_s26, 4   ;;  %s1704_s21 = smov %s1378_s22 }
 0x28b   : > { %s1705_s22 = smov %s1382_s23  ;;  %s1706_s23 = smov %s1555_s11 }
 0x28c   : > { %s1707_s24 = smov %s1539_s26  ;;  %22 = sbr.rel (!%p20_p2) target bundleno = 6 (0x6), region = 97 }
 0x293   :  { %798 = vsyncpa [#allocation3], 1 }
 0x294   :  { %800 = vsyncpa [#allocation3 + $0x1], 1 }
 0x295   :  { %801 = vsyncpa [#allocation6], 1 }
 0x296   :  { %802 = vsyncpa [#allocation4], 1 }
 0x297   :  { %804 = vsyncpa [#allocation4 + $0x1], 1 }

</bundles_post_ra>
